<compile_context>
chip_gen: v7x
topology: tpu7x:2x2x1
jax: 0.10.0
libtpu: 0.0.40
codegen_flags: <defaults>
</compile_context>

<pallas_src>
import functools

import jax
import jax.numpy as jnp
from jax.experimental import pallas as pl
from jax.experimental.pallas import tpu as pltpu


def _round_up(a: int, b: int) -> int:
    return ((a + b - 1) // b) * b


def _summaries_kernel(inv_d, num_groups, x_ref, o_ref, acc1_ref, acc2_ref):
    """Grid = (N tiles, D tiles). Accumulate per-row sum / sum-of-squares."""
    k = pl.program_id(1)

    @pl.when(k == 0)
    def _init():
        acc1_ref[...] = jnp.zeros_like(acc1_ref)
        acc2_ref[...] = jnp.zeros_like(acc2_ref)

    # Hot path: fold the (tn, td) chunk into (tn, 128) accumulators with pure
    # VALU adds on lane-aligned 128-wide slices.  Accumulator traffic is one
    # load + one store per chunk (not per x-vreg); no cross-lane ops here.
    s1 = acc1_ref[...]
    s2 = acc2_ref[...]
    for j in range(num_groups):  # static unroll; num_groups = td // 128
        xj = x_ref[:, j * 128:(j + 1) * 128].astype(jnp.float32)
        s1 = s1 + xj
        s2 = s2 + xj * xj
    acc1_ref[...] = s1
    acc2_ref[...] = s2

    @pl.when(k == pl.num_programs(1) - 1)
    def _finalize():
        # Cross-lane (XLU) reduce of the 128-wide accumulators, once per
        # N-tile, then scale by 1/D.
        m1 = jnp.sum(acc1_ref[...], axis=1, keepdims=True) * jnp.float32(inv_d)
        m2 = jnp.sum(acc2_ref[...], axis=1, keepdims=True) * jnp.float32(inv_d)
        # Assemble the (tn, 2) output via a broadcasted-iota select and a
        # single store (no 1-lane concatenate / relayout).
        col = jax.lax.broadcasted_iota(jnp.int32, (1, 2), 1)
        o_ref[...] = jnp.where(col == 0, m1, m2).astype(o_ref.dtype)


def true_summaries_gaussian(
    x,
    *,
    batch_norm_last_layer: bool = False,
    affine_batch_norm: bool = True,
    gamma=None,
    beta=None,
    eps: float = 1e-5,
    block_n: int = 512,
    block_d: int = 4096,
):
    """Pallas implementation of TrueSummariesComputationGaussian.forward.

    Default tiles (512 x 4096, f32) keep 2x input buffer + scratch well under
    v7x's 64 MiB per-TC VMEM; they also suit v5e/v6e once vmem_limit_bytes is
    raised past the scoped defaults (done below from the actual tile size).
    """
    assert x.ndim == 2, "expected x of shape (N, D)"
    n, d = x.shape
    assert d >= 1 and n >= 1

    itemsize = jnp.dtype(x.dtype).itemsize
    # Sublane packing for the input dtype: 8 (f32), 16 (bf16), 32 (int8/fp8).
    sublane = 32 // max(itemsize, 1)

    # Tile sizes honoring the (8, 128) constraint and dtype packing.
    if n <= block_n:
        tn = _round_up(n, sublane)
    else:
        tn = _round_up(block_n, sublane)
    n_pad = _round_up(n, tn)
    if d <= block_d:
        td = _round_up(d, 128)
    else:
        td = _round_up(block_d, 128)
    d_pad = _round_up(d, td)
    num_groups = td // 128

    # Zero-pad to exact tile multiples (zeros do not perturb the sums; padded
    # rows are sliced off below). Divide by the *true* D.
    if (n_pad, d_pad) != (n, d):
        x_in = jnp.pad(x, ((0, n_pad - n), (0, d_pad - d)))
    else:
        x_in = x

    # Keep the kernel output in f32 when BN follows, to avoid a narrow-dtype
    # round trip of the means before normalization.
    out_dtype = jnp.float32 if batch_norm_last_layer else x.dtype
    out_itemsize = jnp.dtype(out_dtype).itemsize

    grid = (n_pad // tn, d_pad // td)
    kernel = functools.partial(_summaries_kernel, 1.0 / float(d), num_groups)

    # Explicit scoped-VMEM budget: double-buffered input tile + the two
    # (tn, 128) f32 accumulators + output blocks + headroom.
    in_tile_bytes = tn * td * itemsize
    scratch_bytes = 2 * tn * 128 * 4
    out_bytes = 2 * tn * 2 * out_itemsize
    vmem_limit = 2 * in_tile_bytes + scratch_bytes + out_bytes + (2 << 20)
    vmem_limit = max(vmem_limit, 16 << 20)

    out_padded = pl.pallas_call(
        kernel,
        out_shape=jax.ShapeDtypeStruct((n_pad, 2), out_dtype),
        grid_spec=pltpu.PrefetchScalarGridSpec(
            num_scalar_prefetch=0,
            grid=grid,
            in_specs=[pl.BlockSpec((tn, td), lambda i, k: (i, k))],
            out_specs=pl.BlockSpec((tn, 2), lambda i, k: (i, 0)),
            scratch_shapes=[
                pltpu.VMEM((tn, 128), jnp.float32),  # folded sum accumulator
                pltpu.VMEM((tn, 128), jnp.float32),  # folded sum-of-squares
            ],
        ),
        compiler_params=pltpu.CompilerParams(
            dimension_semantics=("parallel", "arbitrary"),
            vmem_limit_bytes=vmem_limit),
        cost_estimate=pl.CostEstimate(
            flops=3 * n * d,
            transcendentals=0,
            bytes_accessed=n * d * itemsize + n * 2 * out_itemsize),
    )(x_in)

    out = out_padded[:n]  # (N, 2)

    if batch_norm_last_layer:
        # BatchNorm1d(2), training mode (biased batch statistics), done as a
        # cheap JAX epilogue on the tiny (N, 2) array so the kernel stays
        # tileable over N with correct full-batch statistics.
        # TODO(synk): eval-mode running-stats path not implemented
        # (training-mode batch stats only).
        o32 = out.astype(jnp.float32)
        mu = jnp.mean(o32, axis=0, keepdims=True)
        var = jnp.mean((o32 - mu) ** 2, axis=0, keepdims=True)
        o32 = (o32 - mu) * jax.lax.rsqrt(var + jnp.float32(eps))
        if affine_batch_norm:
            assert gamma is not None and beta is not None, (
                "affine batch norm requires gamma and beta")
            o32 = (o32 * gamma.reshape(1, 2).astype(jnp.float32)
                   + beta.reshape(1, 2).astype(jnp.float32))
        out = o32.astype(x.dtype)

    return out


def _reference(x, *, batch_norm_last_layer=False, affine_batch_norm=True,
               gamma=None, beta=None, eps=1e-5):
    out = jnp.concatenate(
        [jnp.mean(x, axis=1, keepdims=True),
         jnp.mean(x ** 2, axis=1, keepdims=True)], axis=1)
    if batch_norm_last_layer:
        mu = jnp.mean(out, axis=0, keepdims=True)
        var = jnp.mean((out - mu) ** 2, axis=0, keepdims=True)
        out = (out - mu) / jnp.sqrt(var + eps)
        if affine_batch_norm:
            out = out * gamma.reshape(1, 2) + beta.reshape(1, 2)
    return out


if __name__ == "__main__":
    key = jax.random.PRNGKey(0)
    kx, kx2, kw, kb = jax.random.split(key, 4)

    # Case 1: small shape consistent with the module (N=8 draws, D=128 samples).
    N, D = 8, 128
    x = jax.random.normal(kx, (N, D), dtype=jnp.float32) * 2.0 + 0.5

    # Unused nn.Linear(1, 1) parameters from __init__ (do not enter forward()).
    _linear_w = jax.random.uniform(kw, (1, 1), minval=-1.0, maxval=1.0)
    _linear_b = jax.random.uniform(kb, (1,), minval=-1.0, maxval=1.0)

    out = jax.block_until_ready(true_summaries_gaussian(x))
    ref = _reference(x)
    assert out.shape == (N, 2)
    assert jnp.allclose(out, ref, atol=1e-5, rtol=1e-5)

    # Case 2: exercise the tiled + padded path (multi-block grid over N and D,
    # multi-group lane fold inside each chunk).
    N2, D2 = 40, 1000
    x2 = jax.random.normal(kx2, (N2, D2), dtype=jnp.float32) - 1.25
    out2 = jax.block_until_ready(
        true_summaries_gaussian(x2, block_n=16, block_d=512))
    ref2 = _reference(x2)
    assert out2.shape == (N2, 2)
    assert jnp.allclose(out2, ref2, atol=1e-4, rtol=1e-4)

    # Case 3: batch-norm variant (BN epilogue in plain JAX, f32 kernel output).
    gamma = jnp.ones((2,), dtype=jnp.float32)
    beta = jnp.zeros((2,), dtype=jnp.float32)
    out_bn = jax.block_until_ready(true_summaries_gaussian(
        x, batch_norm_last_layer=True, affine_batch_norm=True,
        gamma=gamma, beta=beta))
    ref_bn = _reference(x, batch_norm_last_layer=True, affine_batch_norm=True,
                        gamma=gamma, beta=beta)
    assert jnp.allclose(out_bn, ref_bn, atol=1e-4, rtol=1e-4)

    # Case 4: bf16 input exercises the dtype-aware sublane rounding (tn -> 16).
    x3 = (jax.random.normal(kx2, (12, 384), dtype=jnp.float32)).astype(jnp.bfloat16)
    out3 = jax.block_until_ready(true_summaries_gaussian(x3))
    ref3 = _reference(x3.astype(jnp.float32)).astype(jnp.bfloat16)
    assert out3.shape == (12, 2)
    assert jnp.allclose(out3.astype(jnp.float32), ref3.astype(jnp.float32),
                        atol=2e-2, rtol=2e-2)

    print("KERNEL_OK")
</pallas_src>

<mosaic_0001>
module attributes {stable_mosaic.version = 11 : i64} {
  func.func @_summaries_kernel(%arg0: i32, %arg1: i32, %arg2: memref<8x128xf32, #tpu.memory_space<vmem>>, %arg3: memref<8x2xf32, #tpu.memory_space<vmem>>, %arg4: memref<8x128xf32, #tpu.memory_space<vmem>>, %arg5: memref<8x128xf32, #tpu.memory_space<vmem>>) attributes {dimension_semantics = [#tpu.dimension_semantics<parallel>, #tpu.dimension_semantics<arbitrary>], iteration_bounds = array<i64: 1, 1>, scalar_prefetch = 0 : i64, scratch_operands = 2 : i64, tpu.core_type = #tpu.core_type<tc>, window_params = [{transform_indices = @transform_0, window_bounds = array<i64: 8, 128>}, {transform_indices = @transform_1, window_bounds = array<i64: 8, 2>}]} {
    %c0_i32 = arith.constant 0 : i32
    %0 = arith.cmpi eq, %arg1, %c0_i32 : i32
    %1 = arith.extui %0 : i1 to i32
    %c0_i32_0 = arith.constant 0 : i32
    %2 = arith.cmpi ne, %1, %c0_i32_0 : i32
    scf.if %2 {
      %cst = arith.constant 0.000000e+00 : f32
      %14 = vector.broadcast %cst : f32 to vector<8x128xf32>
      %c0_12 = arith.constant 0 : index
      %c0_13 = arith.constant 0 : index
      %15 = vector.load %arg4[%c0_12, %c0_13] : memref<8x128xf32, #tpu.memory_space<vmem>>, vector<8x128xf32>
      tpu.vector_store %arg4[%c0_12, %c0_13], %14 {strides = array<i32>} : memref<8x128xf32, #tpu.memory_space<vmem>>, vector<8x128xf32>,
      %cst_14 = arith.constant 0.000000e+00 : f32
      %16 = vector.broadcast %cst_14 : f32 to vector<8x128xf32>
      %c0_15 = arith.constant 0 : index
      %c0_16 = arith.constant 0 : index
      %17 = vector.load %arg5[%c0_15, %c0_16] : memref<8x128xf32, #tpu.memory_space<vmem>>, vector<8x128xf32>
      tpu.vector_store %arg5[%c0_15, %c0_16], %16 {strides = array<i32>} : memref<8x128xf32, #tpu.memory_space<vmem>>, vector<8x128xf32>,
    } else {
    }
    %c0 = arith.constant 0 : index
    %c0_1 = arith.constant 0 : index
    %3 = vector.load %arg4[%c0, %c0_1] : memref<8x128xf32, #tpu.memory_space<vmem>>, vector<8x128xf32>
    %c0_2 = arith.constant 0 : index
    %c0_3 = arith.constant 0 : index
    %4 = vector.load %arg5[%c0_2, %c0_3] : memref<8x128xf32, #tpu.memory_space<vmem>>, vector<8x128xf32>
    %c0_4 = arith.constant 0 : index
    %c0_5 = arith.constant 0 : index
    %5 = vector.load %arg2[%c0_4, %c0_5] : memref<8x128xf32, #tpu.memory_space<vmem>>, vector<8x128xf32>
    %6 = arith.addf %3, %5 : vector<8x128xf32>
    %7 = arith.mulf %5, %5 : vector<8x128xf32>
    %8 = arith.addf %4, %7 : vector<8x128xf32>
    %c0_6 = arith.constant 0 : index
    %c0_7 = arith.constant 0 : index
    %9 = vector.load %arg4[%c0_6, %c0_7] : memref<8x128xf32, #tpu.memory_space<vmem>>, vector<8x128xf32>
    tpu.vector_store %arg4[%c0_6, %c0_7], %6 {strides = array<i32>} : memref<8x128xf32, #tpu.memory_space<vmem>>, vector<8x128xf32>,
    %c0_8 = arith.constant 0 : index
    %c0_9 = arith.constant 0 : index
    %10 = vector.load %arg5[%c0_8, %c0_9] : memref<8x128xf32, #tpu.memory_space<vmem>>, vector<8x128xf32>
    tpu.vector_store %arg5[%c0_8, %c0_9], %8 {strides = array<i32>} : memref<8x128xf32, #tpu.memory_space<vmem>>, vector<8x128xf32>,
    %c0_i32_10 = arith.constant 0 : i32
    %11 = arith.cmpi eq, %arg1, %c0_i32_10 : i32
    %12 = arith.extui %11 : i1 to i32
    %c0_i32_11 = arith.constant 0 : i32
    %13 = arith.cmpi ne, %12, %c0_i32_11 : i32
    scf.if %13 {
      %c0_12 = arith.constant 0 : index
      %c0_13 = arith.constant 0 : index
      %14 = vector.load %arg4[%c0_12, %c0_13] : memref<8x128xf32, #tpu.memory_space<vmem>>, vector<8x128xf32>
      %cst = arith.constant dense<0.000000e+00> : vector<8xf32>
      %15 = vector.multi_reduction <add>, %14, %cst [1] : vector<8x128xf32> to vector<8xf32>
      %16 = vector.shape_cast %15 : vector<8xf32> to vector<8x1xf32>
      %cst_14 = arith.constant 7.812500e-03 : f32
      %17 = vector.broadcast %cst_14 : f32 to vector<8x1xf32>
      %18 = arith.mulf %16, %17 : vector<8x1xf32>
      %c0_15 = arith.constant 0 : index
      %c0_16 = arith.constant 0 : index
      %19 = vector.load %arg5[%c0_15, %c0_16] : memref<8x128xf32, #tpu.memory_space<vmem>>, vector<8x128xf32>
      %cst_17 = arith.constant dense<0.000000e+00> : vector<8xf32>
      %20 = vector.multi_reduction <add>, %19, %cst_17 [1] : vector<8x128xf32> to vector<8xf32>
      %21 = vector.shape_cast %20 : vector<8xf32> to vector<8x1xf32>
      %cst_18 = arith.constant 7.812500e-03 : f32
      %22 = vector.broadcast %cst_18 : f32 to vector<8x1xf32>
      %23 = arith.mulf %21, %22 : vector<8x1xf32>
      %24 = tpu.iota {dimensions = array<i32: 1>} : vector<1x2xi32>
      %c0_i32_19 = arith.constant 0 : i32
      %25 = vector.broadcast %c0_i32_19 : i32 to vector<1x2xi32>
      %26 = arith.cmpi eq, %24, %25 : vector<1x2xi32>
      %27 = vector.shape_cast %26 : vector<1x2xi1> to vector<1x2xi1>
      %28 = vector.broadcast %27 : vector<1x2xi1> to vector<8x2xi1>
      %29 = vector.shape_cast %18 : vector<8x1xf32> to vector<8x1xf32>
      %30 = vector.broadcast %29 : vector<8x1xf32> to vector<8x2xf32>
      %31 = vector.shape_cast %23 : vector<8x1xf32> to vector<8x1xf32>
      %32 = vector.broadcast %31 : vector<8x1xf32> to vector<8x2xf32>
      %33 = arith.select %28, %30, %32 : vector<8x2xi1>, vector<8x2xf32>
      %c0_20 = arith.constant 0 : index
      %c0_21 = arith.constant 0 : index
      %34 = vector.load %arg3[%c0_20, %c0_21] : memref<8x2xf32, #tpu.memory_space<vmem>>, vector<8x2xf32>
      tpu.vector_store %arg3[%c0_20, %c0_21], %33 {strides = array<i32>} : memref<8x2xf32, #tpu.memory_space<vmem>>, vector<8x2xf32>,
    } else {
    }
    return
  }
  func.func @transform_0(%arg0: i32, %arg1: i32) -> (i32, i32) {
    %c0_i32 = arith.constant 0 : i32
    return %arg0, %arg1 : i32, i32
  }
  func.func @transform_1(%arg0: i32, %arg1: i32) -> (i32, i32) {
    %c0_i32 = arith.constant 0 : i32
    %c0_i32_0 = arith.constant 0 : i32
    return %arg0, %c0_i32 : i32, i32
  }
}

</mosaic_0001>

<bundles_post_ra>
// kernel: tpu_custom_call.1
= control target key start
LH: loop header
LB: loop body
LE: loop exit
PB: predicated region body
PF: predicated region fallthrough
CT: control target
= control target key end

     0   :  { %6 = vsyncpa [#allocation5], 0  ;;  %s83_s6 = smov [#allocation4]   ;;  %s109_s0 = inlined_call_operand.hbm [shape: f32[8,128], index: 0, kind: input, shape index: {}]   ;;  %s110_s1 = inlined_call_operand.vmem [shape: f32[8,2], index: 1, kind: output, shape index: {}]  }
   0x1   :  { %s13_s7 = sshll.u32 %s83_s6, 4  ;;  %s59_s10 = scalar_lea.hbm %s109_s0, 128  ;;  %s14_s7 = int_to_ptr.vmem [resolvable:$true] %s13_s7 }
   0x2   :  { %p60_p0 = scmp.ne.s32.totalorder %s109_s0, %s59_s10  ;;  %p63_p1 = scmp.lt.u32.totalorder %s59_s10, %s109_s0 }
   0x4   :  { %p65_p2 = pnand %p63_p1, %p60_p0 }
   0x6   :  { %68 = shalt.err (!%p65_p2)
}
   0x7   :  { %s69_s15 = scalar_lea.vmem %s14_s7, 128  ;;  %p74_p4 = scmp.lt.s32.totalorder %s14_s7, %s14_s7 }
   0x8   :  { %p70_p3 = scmp.ne.s32.totalorder %s14_s7, %s69_s15  ;;  %p75_p5 = scmp.lt.s32.totalorder %s69_s15, %s69_s15 }
   0xa   :  { %p76_p6 = por %p75_p5, %p74_p4 }
   0xc   :  { %p77_p7 = pnand %p76_p6, %p70_p3 }
   0xe   :  { %80 = shalt.err (!%p77_p7)
}
   0xf   :  { %16 = dma.hbm_to_vmem [thread:$0]  %s109_s0, 128, %s14_s7, [#allocation5]  }
  0x10   :  { %81 = dma.done.wait [#allocation5], 128  }
  0x11   :  { %82 = vsyncadd [#allocation5], 4294967168  ;;  %v28_v0 = vld [vmem:[#allocation4] sm:$0xff]  ;;  %v45_v2 = vlaneseq  ;;  %vm51_vm1 = vcmask 15360  }
  0x12   :  { %38 = vadd.xlane.f32.xlu0 %v28_v0  ;;  %v30_v1 = vmul.f32 %v28_v0, %v28_v0 }
  0x13   :  { %v46_v4 = vand.u32 127, %v45_v2 }
  0x15   :  { %vm47_vm0 = vcmp.eq.s32.totalorder %v46_v4, 0 }
  0x16   :  { %42 = vadd.xlane.f32.xlu0 %v30_v1 }
  0x9f   :  { %v39_v3 = vpop.xlane.xlu0 %38 }
  0xa0   :  { %v40_v6 = vmul.f32 0.0078125, %v39_v3 }
  0xa3   :  { %v43_v5 = vpop.xlane.xlu0 %42 }
  0xa4   :  { %v44_v7 = vmul.f32 0.0078125, %v43_v5 }
  0xa6   :  { %v50_v8 = vsel %vm47_vm0, %v40_v6, %v44_v7 }
  0xa7   :  { %52 = vst.msk [vmem:[%s110_s1] sm:$0xff] %vm51_vm1, %v50_v8 }
  0xa8   :  { %57 = vsyncpa [#allocation5], 1 }

</bundles_post_ra>
